<compile_context>
chip_gen: v5e
topology: v5e:2x2
jax: 0.10.0
libtpu: 0.0.40
codegen_flags: <defaults>
</compile_context>

<pallas_src>
import jax
import jax.numpy as jnp
from jax import lax
from jax.experimental import pallas as pl
from jax.experimental.pallas import tpu as pltpu

KS = 4        # kernel_size
STRIDE = 2
PAD = 1
EPS = 1e-5
NEG_SLOPE = 0.2

_L_TILE_TARGET = 512     # output voxels per tile (multiple of 128 -> lane dense)
_K_TILE_TARGET = 2048    # patch features per tile (multiple of 128)
_VMEM_LIMIT = 32 * 1024 * 1024


def _conv_stats_kernel(p_ref, w_ref, y_ref, ssum_ref, ssq_ref):
    """One (Cout, TL) conv tile + fused per-channel sum / sum-of-squares.

    p_ref:    (1, TK, TL)  bf16 im2col patch tile (K-major rows, L on lanes)
    w_ref:    (Cout, TK)   bf16 weight tile
    y_ref:    (1, Cout, TL) f32 conv output tile  (resident accumulator across K axis)
    ssum_ref: (1, Cout, 1)  f32 per-sample channel sums          (resident across L,K)
    ssq_ref:  (1, Cout, 1)  f32 per-sample channel sum-of-squares (resident across L,K)
    """
    lt = pl.program_id(1)
    kt = pl.program_id(2)

    @pl.when(kt == 0)
    def _():
        y_ref[...] = jnp.zeros_like(y_ref)

    # MXU: (Cout, TK) @ (TK, TL) -> (Cout, TL), bf16 inputs, f32 accumulation.
    y_ref[0] += jnp.dot(w_ref[...], p_ref[0], preferred_element_type=jnp.float32)

    # When the K reduction for this L tile finishes, fold its statistics in
    # while the tile is still live in VMEM (no second traversal of y).
    @pl.when(kt == pl.num_programs(2) - 1)
    def _():
        y = y_ref[0]                                       # (Cout, TL) f32

        @pl.when(lt == 0)
        def _():
            ssum_ref[...] = jnp.zeros_like(ssum_ref)
            ssq_ref[...] = jnp.zeros_like(ssq_ref)

        ssum_ref[0] += jnp.sum(y, axis=1, keepdims=True)   # (Cout, 1)
        ssq_ref[0] += jnp.sum(y * y, axis=1, keepdims=True)


def _norm_lrelu_kernel(y_ref, sc_ref, sh_ref, o_ref):
    """Apply y * scale + shift (== (y - mean) * rstd) then LeakyReLU(0.2) per tile."""
    z = y_ref[0] * sc_ref[0] + sh_ref[0]                   # (Cout, TL)
    o_ref[0] = jnp.where(z >= 0, z, NEG_SLOPE * z).astype(o_ref.dtype)


def _im2col_3d(x):
    """x: (N, C, D, H, W) -> patches (N, C*KS^3, Do*Ho*Wo) with L on the last dim."""
    N, C, D, H, W = x.shape
    Do = (D + 2 * PAD - KS) // STRIDE + 1
    Ho = (H + 2 * PAD - KS) // STRIDE + 1
    Wo = (W + 2 * PAD - KS) // STRIDE + 1
    xp = jnp.pad(x, ((0, 0), (0, 0), (PAD, PAD), (PAD, PAD), (PAD, PAD)))
    slabs = []
    for i in range(KS):
        for j in range(KS):
            for k in range(KS):
                slabs.append(
                    xp[:, :,
                       i:i + STRIDE * Do:STRIDE,
                       j:j + STRIDE * Ho:STRIDE,
                       k:k + STRIDE * Wo:STRIDE])
    # TODO(synk): build patch tiles inside the kernel (memory_space=pl.ANY +
    # pltpu.make_async_copy of the contributing input slabs) to avoid materializing
    # the KS^3-times-expanded im2col matrix in HBM.
    pat = jnp.stack(slabs, axis=2)                          # (N, C, KS^3, Do, Ho, Wo)
    return pat.reshape(N, C * KS ** 3, Do * Ho * Wo), (Do, Ho, Wo)


def _pick_tile(dim, target):
    """Return (tile_size, padded_dim). Full dim if small, else tile (mult. of 128)."""
    if dim <= target:
        return dim, dim
    padded = ((dim + target - 1) // target) * target
    return target, padded


def basic_block_forward(x, weight, bias=None):
    """x: (N, Cin, D, H, W); weight: (Cout, Cin, KS, KS, KS); bias: (Cout,).

    The conv bias is not used by the kernels: InstanceNorm3d (no affine) subtracts the
    per-channel mean, which cancels any per-channel constant exactly.
    """
    del bias
    N, Cin, D, H, W = x.shape
    Cout = weight.shape[0]

    patches, (Do, Ho, Wo) = _im2col_3d(x.astype(jnp.bfloat16))  # (N, K, L) bf16
    L = Do * Ho * Wo
    K = Cin * KS ** 3

    TL, Lp = _pick_tile(L, _L_TILE_TARGET)
    TK, Kp = _pick_tile(K, _K_TILE_TARGET)

    # Zero-pad L / K to tile multiples; zero patch rows/cols contribute 0 to the conv
    # and 0 to the statistics (no bias), so true L is used as the stats divisor.
    patches = jnp.pad(patches, ((0, 0), (0, Kp - K), (0, Lp - L)))
    w2d = jnp.pad(weight.reshape(Cout, K), ((0, 0), (0, Kp - K))).astype(jnp.bfloat16)

    n_lt = Lp // TL
    n_kt = Kp // TK

    cost = pl.CostEstimate(
        flops=2 * N * Cout * Lp * Kp,
        transcendentals=0,
        bytes_accessed=(patches.size * patches.dtype.itemsize
                        + w2d.size * w2d.dtype.itemsize
                        + N * Cout * Lp * 4))

    # Pass 1: conv tiles (lane-dense (Cout, TL) output) + fused channel statistics.
    y, ssum, ssq = pl.pallas_call(
        _conv_stats_kernel,
        out_shape=(
            jax.ShapeDtypeStruct((N, Cout, Lp), jnp.float32),
            jax.ShapeDtypeStruct((N, Cout, 1), jnp.float32),
            jax.ShapeDtypeStruct((N, Cout, 1), jnp.float32),
        ),
        grid_spec=pltpu.PrefetchScalarGridSpec(
            num_scalar_prefetch=0,
            grid=(N, n_lt, n_kt),
            in_specs=[
                pl.BlockSpec((1, TK, TL), lambda n, lt, kt: (n, kt, lt)),
                pl.BlockSpec((Cout, TK), lambda n, lt, kt: (0, kt)),
            ],
            out_specs=[
                pl.BlockSpec((1, Cout, TL), lambda n, lt, kt: (n, 0, lt)),
                pl.BlockSpec((1, Cout, 1), lambda n, lt, kt: (n, 0, 0)),
                pl.BlockSpec((1, Cout, 1), lambda n, lt, kt: (n, 0, 0)),
            ],
        ),
        compiler_params=pltpu.CompilerParams(
            dimension_semantics=("parallel", "arbitrary", "arbitrary"),
            vmem_limit_bytes=_VMEM_LIMIT),
        cost_estimate=cost,
    )(patches, w2d)

    # InstanceNorm3d statistics (biased variance, eps=1e-5, no affine) — tiny, plain JAX.
    mean = ssum[:, :, 0] / float(L)
    var = jnp.maximum(ssq[:, :, 0] / float(L) - mean * mean, 0.0)
    rstd = lax.rsqrt(var + EPS)
    scale = rstd[:, :, None]                                # (N, Cout, 1)
    shift = (-mean * rstd)[:, :, None]                      # (N, Cout, 1)

    # Pass 2: normalize + LeakyReLU, tiled over L (lane-dense reads and writes).
    out = pl.pallas_call(
        _norm_lrelu_kernel,
        out_shape=jax.ShapeDtypeStruct((N, Cout, Lp), jnp.float32),
        grid_spec=pltpu.PrefetchScalarGridSpec(
            num_scalar_prefetch=0,
            grid=(N, n_lt),
            in_specs=[
                pl.BlockSpec((1, Cout, TL), lambda n, lt: (n, 0, lt)),
                pl.BlockSpec((1, Cout, 1), lambda n, lt: (n, 0, 0)),
                pl.BlockSpec((1, Cout, 1), lambda n, lt: (n, 0, 0)),
            ],
            out_specs=pl.BlockSpec((1, Cout, TL), lambda n, lt: (n, 0, lt)),
        ),
        compiler_params=pltpu.CompilerParams(
            dimension_semantics=("parallel", "parallel"),
            vmem_limit_bytes=_VMEM_LIMIT),
    )(y, scale, shift)

    # (N, Cout, L) is already NCDHW-ordered: reshape only, no transpose.
    return out[:, :, :L].reshape(N, Cout, Do, Ho, Wo)


def _reference(x, weight, bias):
    # Mirror the kernel's bf16 operand rounding (f32 accumulation) for a tight check.
    xb = x.astype(jnp.bfloat16).astype(jnp.float32)
    wb = weight.astype(jnp.bfloat16).astype(jnp.float32)
    y = lax.conv_general_dilated(
        xb, wb,
        window_strides=(STRIDE,) * 3,
        padding=[(PAD, PAD)] * 3,
        dimension_numbers=("NCDHW", "OIDHW", "NCDHW"),
        precision=lax.Precision.HIGHEST)
    y = y + bias.reshape(1, -1, 1, 1, 1)
    mean = jnp.mean(y, axis=(2, 3, 4), keepdims=True)
    var = jnp.mean((y - mean) ** 2, axis=(2, 3, 4), keepdims=True)
    yn = (y - mean) * lax.rsqrt(var + EPS)
    return jnp.where(yn >= 0, yn, NEG_SLOPE * yn)


if __name__ == "__main__":
    key = jax.random.PRNGKey(0)
    k_x, k_w, k_b = jax.random.split(key, 3)

    N, Cin, Cout = 2, 4, 8
    D = H = W = 8                    # output spatial = 4x4x4 -> L = 64

    x = jax.random.normal(k_x, (N, Cin, D, H, W), dtype=jnp.float32)
    weight = 0.1 * jax.random.normal(k_w, (Cout, Cin, KS, KS, KS), dtype=jnp.float32)
    bias = 0.1 * jax.random.normal(k_b, (Cout,), dtype=jnp.float32)

    out = basic_block_forward(x, weight, bias)
    jax.block_until_ready(out)

    ref = _reference(x, weight, bias)
    assert out.shape == (N, Cout, D // 2, H // 2, W // 2), out.shape
    max_err = float(jnp.max(jnp.abs(out - ref)))
    assert jnp.allclose(out, ref, atol=2e-3, rtol=2e-3), max_err

    print("KERNEL_OK")
</pallas_src>

<mosaic_0001>
module attributes {stable_mosaic.version = 11 : i64} {
  func.func @_conv_stats_kernel(%arg0: i32, %arg1: i32, %arg2: i32, %arg3: memref<1x256x64xbf16, #tpu.memory_space<vmem>>, %arg4: memref<8x256xbf16, #tpu.memory_space<vmem>>, %arg5: memref<1x8x64xf32, #tpu.memory_space<vmem>>, %arg6: memref<1x8x1xf32, #tpu.memory_space<vmem>>, %arg7: memref<1x8x1xf32, #tpu.memory_space<vmem>>) attributes {dimension_semantics = [#tpu.dimension_semantics<parallel>, #tpu.dimension_semantics<arbitrary>, #tpu.dimension_semantics<arbitrary>], iteration_bounds = array<i64: 2, 1, 1>, scalar_prefetch = 0 : i64, scratch_operands = 0 : i64, tpu.core_type = #tpu.core_type<tc>, window_params = [{transform_indices = @transform_0, window_bounds = array<i64: 1, 256, 64>}, {transform_indices = @transform_1, window_bounds = array<i64: 8, 256>}, {transform_indices = @transform_2, window_bounds = array<i64: 1, 8, 64>}, {transform_indices = @transform_3, window_bounds = array<i64: 1, 8, 1>}, {transform_indices = @transform_4, window_bounds = array<i64: 1, 8, 1>}]} {
    %c0_i32 = arith.constant 0 : i32
    %0 = arith.cmpi eq, %arg2, %c0_i32 : i32
    %1 = arith.extui %0 : i1 to i32
    %c0_i32_0 = arith.constant 0 : i32
    %2 = arith.cmpi ne, %1, %c0_i32_0 : i32
    scf.if %2 {
      %cst_13 = arith.constant 0.000000e+00 : f32
      %16 = vector.broadcast %cst_13 : f32 to vector<1x8x64xf32>
      %c0_14 = arith.constant 0 : index
      %c0_15 = arith.constant 0 : index
      %c0_16 = arith.constant 0 : index
      %17 = vector.load %arg5[%c0_14, %c0_15, %c0_16] : memref<1x8x64xf32, #tpu.memory_space<vmem>>, vector<1x8x64xf32>
      tpu.vector_store %arg5[%c0_14, %c0_15, %c0_16], %16 {strides = array<i32>} : memref<1x8x64xf32, #tpu.memory_space<vmem>>, vector<1x8x64xf32>,
    } else {
    }
    %c0 = arith.constant 0 : index
    %c0_1 = arith.constant 0 : index
    %c0_2 = arith.constant 0 : index
    %3 = vector.load %arg5[%c0, %c0_1, %c0_2] : memref<1x8x64xf32, #tpu.memory_space<vmem>>, vector<1x8x64xf32>
    %4 = vector.shape_cast %3 : vector<1x8x64xf32> to vector<8x64xf32>
    %c0_3 = arith.constant 0 : index
    %c0_4 = arith.constant 0 : index
    %5 = vector.load %arg4[%c0_3, %c0_4] : memref<8x256xbf16, #tpu.memory_space<vmem>>, vector<8x256xbf16>
    %c0_5 = arith.constant 0 : index
    %c0_6 = arith.constant 0 : index
    %c0_7 = arith.constant 0 : index
    %6 = vector.load %arg3[%c0_5, %c0_6, %c0_7] : memref<1x256x64xbf16, #tpu.memory_space<vmem>>, vector<1x256x64xbf16>
    %7 = vector.shape_cast %6 : vector<1x256x64xbf16> to vector<256x64xbf16>
    %cst = arith.constant dense<0.000000e+00> : vector<8x64xf32>
    %8 = tpu.matmul %5, %7, %cst {dimension_numbers = #tpu.dot_dimension_numbers<[1], [0], [0], [1], [0, 0, 1, 1], [], []>} : vector<8x256xbf16>, vector<256x64xbf16>, vector<8x64xf32> -> vector<8x64xf32>
    %9 = arith.addf %4, %8 : vector<8x64xf32>
    %c0_8 = arith.constant 0 : index
    %c0_9 = arith.constant 0 : index
    %c0_10 = arith.constant 0 : index
    %10 = vector.load %arg5[%c0_8, %c0_9, %c0_10] : memref<1x8x64xf32, #tpu.memory_space<vmem>>, vector<1x8x64xf32>
    %11 = vector.shape_cast %10 : vector<1x8x64xf32> to vector<8x64xf32>
    %12 = vector.shape_cast %9 : vector<8x64xf32> to vector<1x8x64xf32>
    tpu.vector_store %arg5[%c0_8, %c0_9, %c0_10], %12 {strides = array<i32>} : memref<1x8x64xf32, #tpu.memory_space<vmem>>, vector<1x8x64xf32>,
    %c0_i32_11 = arith.constant 0 : i32
    %13 = arith.cmpi eq, %arg2, %c0_i32_11 : i32
    %14 = arith.extui %13 : i1 to i32
    %c0_i32_12 = arith.constant 0 : i32
    %15 = arith.cmpi ne, %14, %c0_i32_12 : i32
    scf.if %15 {
      %c0_13 = arith.constant 0 : index
      %c0_14 = arith.constant 0 : index
      %c0_15 = arith.constant 0 : index
      %16 = vector.load %arg5[%c0_13, %c0_14, %c0_15] : memref<1x8x64xf32, #tpu.memory_space<vmem>>, vector<1x8x64xf32>
      %17 = vector.shape_cast %16 : vector<1x8x64xf32> to vector<8x64xf32>
      %c0_i32_16 = arith.constant 0 : i32
      %18 = arith.cmpi eq, %arg1, %c0_i32_16 : i32
      %19 = arith.extui %18 : i1 to i32
      %c0_i32_17 = arith.constant 0 : i32
      %20 = arith.cmpi ne, %19, %c0_i32_17 : i32
      scf.if %20 {
        %cst_32 = arith.constant 0.000000e+00 : f32
        %38 = vector.broadcast %cst_32 : f32 to vector<1x8x1xf32>
        %c0_33 = arith.constant 0 : index
        %c0_34 = arith.constant 0 : index
        %c0_35 = arith.constant 0 : index
        %39 = vector.load %arg6[%c0_33, %c0_34, %c0_35] : memref<1x8x1xf32, #tpu.memory_space<vmem>>, vector<1x8x1xf32>
        tpu.vector_store %arg6[%c0_33, %c0_34, %c0_35], %38 {strides = array<i32>} : memref<1x8x1xf32, #tpu.memory_space<vmem>>, vector<1x8x1xf32>,
        %cst_36 = arith.constant 0.000000e+00 : f32
        %40 = vector.broadcast %cst_36 : f32 to vector<1x8x1xf32>
        %c0_37 = arith.constant 0 : index
        %c0_38 = arith.constant 0 : index
        %c0_39 = arith.constant 0 : index
        %41 = vector.load %arg7[%c0_37, %c0_38, %c0_39] : memref<1x8x1xf32, #tpu.memory_space<vmem>>, vector<1x8x1xf32>
        tpu.vector_store %arg7[%c0_37, %c0_38, %c0_39], %40 {strides = array<i32>} : memref<1x8x1xf32, #tpu.memory_space<vmem>>, vector<1x8x1xf32>,
      } else {
      }
      %c0_18 = arith.constant 0 : index
      %c0_19 = arith.constant 0 : index
      %c0_20 = arith.constant 0 : index
      %21 = vector.load %arg6[%c0_18, %c0_19, %c0_20] : memref<1x8x1xf32, #tpu.memory_space<vmem>>, vector<1x8x1xf32>
      %22 = vector.shape_cast %21 : vector<1x8x1xf32> to vector<8x1xf32>
      %cst_21 = arith.constant dense<0.000000e+00> : vector<8xf32>
      %23 = vector.multi_reduction <add>, %17, %cst_21 [1] : vector<8x64xf32> to vector<8xf32>
      %24 = vector.shape_cast %23 : vector<8xf32> to vector<8x1xf32>
      %25 = arith.addf %22, %24 : vector<8x1xf32>
      %c0_22 = arith.constant 0 : index
      %c0_23 = arith.constant 0 : index
      %c0_24 = arith.constant 0 : index
      %26 = vector.load %arg6[%c0_22, %c0_23, %c0_24] : memref<1x8x1xf32, #tpu.memory_space<vmem>>, vector<1x8x1xf32>
      %27 = vector.shape_cast %26 : vector<1x8x1xf32> to vector<8x1xf32>
      %28 = vector.shape_cast %25 : vector<8x1xf32> to vector<1x8x1xf32>
      tpu.vector_store %arg6[%c0_22, %c0_23, %c0_24], %28 {strides = array<i32>} : memref<1x8x1xf32, #tpu.memory_space<vmem>>, vector<1x8x1xf32>,
      %c0_25 = arith.constant 0 : index
      %c0_26 = arith.constant 0 : index
      %c0_27 = arith.constant 0 : index
      %29 = vector.load %arg7[%c0_25, %c0_26, %c0_27] : memref<1x8x1xf32, #tpu.memory_space<vmem>>, vector<1x8x1xf32>
      %30 = vector.shape_cast %29 : vector<1x8x1xf32> to vector<8x1xf32>
      %31 = arith.mulf %17, %17 : vector<8x64xf32>
      %cst_28 = arith.constant dense<0.000000e+00> : vector<8xf32>
      %32 = vector.multi_reduction <add>, %31, %cst_28 [1] : vector<8x64xf32> to vector<8xf32>
      %33 = vector.shape_cast %32 : vector<8xf32> to vector<8x1xf32>
      %34 = arith.addf %30, %33 : vector<8x1xf32>
      %c0_29 = arith.constant 0 : index
      %c0_30 = arith.constant 0 : index
      %c0_31 = arith.constant 0 : index
      %35 = vector.load %arg7[%c0_29, %c0_30, %c0_31] : memref<1x8x1xf32, #tpu.memory_space<vmem>>, vector<1x8x1xf32>
      %36 = vector.shape_cast %35 : vector<1x8x1xf32> to vector<8x1xf32>
      %37 = vector.shape_cast %34 : vector<8x1xf32> to vector<1x8x1xf32>
      tpu.vector_store %arg7[%c0_29, %c0_30, %c0_31], %37 {strides = array<i32>} : memref<1x8x1xf32, #tpu.memory_space<vmem>>, vector<1x8x1xf32>,
    } else {
    }
    return
  }
  func.func @transform_0(%arg0: i32, %arg1: i32, %arg2: i32) -> (i32, i32, i32) {
    %c0_i32 = arith.constant 0 : i32
    return %arg0, %arg2, %arg1 : i32, i32, i32
  }
  func.func @transform_1(%arg0: i32, %arg1: i32, %arg2: i32) -> (i32, i32) {
    %c0_i32 = arith.constant 0 : i32
    %c0_i32_0 = arith.constant 0 : i32
    return %c0_i32, %arg2 : i32, i32
  }
  func.func @transform_2(%arg0: i32, %arg1: i32, %arg2: i32) -> (i32, i32, i32) {
    %c0_i32 = arith.constant 0 : i32
    %c0_i32_0 = arith.constant 0 : i32
    return %arg0, %c0_i32, %arg1 : i32, i32, i32
  }
  func.func @transform_3(%arg0: i32, %arg1: i32, %arg2: i32) -> (i32, i32, i32) {
    %c0_i32 = arith.constant 0 : i32
    %c0_i32_0 = arith.constant 0 : i32
    %c0_i32_1 = arith.constant 0 : i32
    return %arg0, %c0_i32, %c0_i32_0 : i32, i32, i32
  }
  func.func @transform_4(%arg0: i32, %arg1: i32, %arg2: i32) -> (i32, i32, i32) {
    %c0_i32 = arith.constant 0 : i32
    %c0_i32_0 = arith.constant 0 : i32
    %c0_i32_1 = arith.constant 0 : i32
    return %arg0, %c0_i32, %c0_i32_0 : i32, i32, i32
  }
}

</mosaic_0001>

<bundles_post_ra>
// kernel: tpu_custom_call.1
= control target key start
LH: loop header
LB: loop body
LE: loop exit
PB: predicated region body
PF: predicated region fallthrough
CT: control target
= control target key end

     0   :  { %10 = vsyncpa [#allocation3], 0  ;;  %s1062_s0 = inlined_call_operand.vmem [shape: bf16[2,256,64], index: 0, kind: input, shape index: {}]   ;;  %s1063_s1 = inlined_call_operand.vmem [shape: bf16[8,256], index: 1, kind: input, shape index: {}]   ;;  %s1064_s2 = inlined_call_operand.hbm [shape: f32[2,8,64], index: 2, kind: output, shape index: {0}]   ;;  %s1065_s3 = inlined_call_operand.vmem [shape: f32[2,8,1], index: 3, kind: output, shape index: {1}]   ;;  %s1066_s4 = inlined_call_operand.vmem [shape: f32[2,8,1], index: 4, kind: output, shape index: {2}]  }
   0x1   :  { %12 = vsyncpa [#allocation3 + $0x1], 0  ;;  %s916_s15 = smov 0   ;;  %s918_s16 = smov 0  }
   0x2   :  { %s920_s17 = smov 0   ;;  %s922_s18 = smov 0  }
   0x3   :  { %s924_s19 = smov 0   ;;  %s926_s20 = smov 0  }
   0x4 LB: > { %s658_s21 = sadd.s32 4294967295, %s888_s20   ;;  %s659_s22 = sadd.s32 4294967294, %s888_s20   ;;  %s888_s20 = sphi %s926_s20, %s18_s20   ;;  %s884_s19 = sphi %s924_s19, %s1073_s19   ;;  %s880_s18 = sphi %s922_s18, %s1072_s18   ;;  %s876_s17 = sphi %s920_s17, %s1071_s17   ;;  %s872_s16 = sphi %s918_s16, %s1070_s16   ;;  %s868_s15 = sphi %s916_s15, %s1069_s15  }
   0x5   : > { %s37_s23 = sadd.s32 1, %s884_s19  ;;  %s102_s24 = sadd.s32 1, %s876_s17 }
   0x6   : > { %p39_p0 = scmp.ge.s32.totalorder %s37_s23, 2  ;;  %p112_p1 = scmp.ne.s32.totalorder %s876_s17, %s872_s16 }
   0x7   : > { %p113_p2 = scmp.eq.s32.totalorder %s658_s21, 1  ;;  %p118_p3 = scmp.ne.s32.totalorder %s872_s16, %s868_s15 }
   0x8   : > { %s1075_s23 = smov (%p39_p0, %s37_s23), 0  ;;  %p119_p5 = scmp.eq.s32.totalorder %s659_s22, 1 }
   0x9   : > { %p956_p4 = por %p113_p2, %p112_p1  ;;  %s97_s26 = ssub.s32 %s884_s19, %s1075_s23 }
   0xa   : > { %p663_p6 = scmp.ge.s32.totalorder %s888_s20, 1  ;;  %p100_p7 = scmp.eq.s32.totalorder %s97_s26, 0 }
   0xb   : > { %p963_p8 = por %p119_p5, %p118_p3  ;;  %p214_p9 = scmp.lt.s32.totalorder %s888_s20, 3 }
   0xc   : > { %s969_s28 = scalar_select %p100_p7, %s876_s17, %s102_s24  }
   0xd   : > { %p215_p10 = pnand %p663_p6, %p214_p9 }
   0xe   : > { %p261_p11 = scmp.lt.s32.totalorder (!%p215_p10), %s880_s18, 1  ;;  %s245_s10 = sand.u32 (!%p215_p10), 1, %s872_s16  }
   0xf   : > { %218 = sbr.rel (%p215_p10) target bundleno = 324 (0x144), region = 28  ;;  %s664_s11 = sshll.u32 (!%p215_p10), %s245_s10, 3 }
  0x10   : > { %s247_s12 = scalar_lea.vmem (!%p215_p10), [#allocation2], %s664_s11  ;;  %s485_s11 = scalar_lea.sflag (!%p215_p10), [#allocation3], %s245_s10 }
  0x11   : > { %s506_s8 = sshll.u32 (!%p215_p10), %s247_s12, 4  ;;  %s830_s24 = scalar_lea.hbm (!%p215_p10), %s1064_s2, 16  ;;  %s507_s8 = int_to_ptr.vmem [resolvable:$true] %s506_s8 }
  0x14   : > { %s973_s29 = scalar_select %p261_p11, %s880_s18, 1  ;;  %v294_v14 = vld [vmem:[%s1063_s1] sm:$0xff]  ;;  %vm291_vm0 = vcmask 523264   ;;  %v890_v21 = vmov 0.0   ;;  %vm467_vm1 = vcmask 7168  }
  0x15   : > { %v328_v15 = vunpack.c.l.b16 %v294_v14  ;;  %v329_v16 = vunpack.c.h.b16 %v294_v14  ;;  %292 = vst.msk [vmem:[%s247_s12] sm:$0xff] %vm291_vm0, %v890_v21 }
  0x16   : > { %s737_s30 = sshll.u32 %s973_s29, 7  ;;  %s667_s13 = sshll.u32 %s973_s29, 3 }
  0x17   : > { %s979_s7 = scalar_lea.vmem %s1062_s0, %s737_s30  ;;  %v330_v19 = vpack.c.b16 %v328_v15, %v328_v15  ;;  %v331_v20 = vpack.c.b16 %v329_v16, %v329_v16  ;;  %s1006_s22 = scalar_lea.vmem %s1065_s3, %s667_s13 }
  0x18   : > { %v745_v0 = vld [vmem:[%s979_s7 + $0x38] sm:$0xff]  ;;  %v744_v2 = vld [vmem:[%s979_s7 + $0x30] sm:$0xff]  ;;  %v743_v4 = vld [vmem:[%s979_s7 + $0x28] sm:$0xff]  ;;  %468 = vst.msk [vmem:[%s1006_s22] sm:$0xff] %vm467_vm1, %v890_v21  ;;  %s1013_s30 = scalar_lea.vmem %s1066_s4, %s667_s13  ;;  %s734_s29 = sshll.u32 %s880_s18, 3 }
  0x19   : > { %v753_v1 = vld [vmem:[%s979_s7 + $0x78] sm:$0xff]  ;;  %430 = vmatpush.bf16.msra.mxu0 %v745_v0  ;;  %v752_v3 = vld [vmem:[%s979_s7 + $0x70] sm:$0xff]  ;;  %v751_v5 = vld [vmem:[%s979_s7 + $0x68] sm:$0xff]  ;;  %469 = vst.msk [vmem:[%s1013_s30] sm:$0xff] %vm467_vm1, %v890_v21 }
  0x1a   : > { %443 = vmatpush.bf16.msra.mxu1 %v753_v1  ;;  %v742_v6 = vld [vmem:[%s979_s7 + $0x20] sm:$0xff]  ;;  %v741_v8 = vld [vmem:[%s979_s7 + $0x18] sm:$0xff]  ;;  %v740_v10 = vld [vmem:[%s979_s7 + $0x10] sm:$0xff] }
  0x1b   : > { %v750_v7 = vld [vmem:[%s979_s7 + $0x60] sm:$0xff]  ;;  %v749_v9 = vld [vmem:[%s979_s7 + $0x58] sm:$0xff]  ;;  %v748_v11 = vld [vmem:[%s979_s7 + $0x50] sm:$0xff] }
  0x1c   : > { %v739_v12 = vld [vmem:[%s979_s7 + $0x8] sm:$0xff]  ;;  %v738_v17 = vld [vmem:[%s979_s7] sm:$0xff] }
  0x1d   : > { %431 = vmatpush.bf16.msra.mxu0 %v744_v2  ;;  %v747_v13 = vld [vmem:[%s979_s7 + $0x48] sm:$0xff]  ;;  %v746_v18 = vld [vmem:[%s979_s7 + $0x40] sm:$0xff]  ;;  %s504_s7 = scalar_lea.hbm %s1064_s2, %s734_s29 }
  0x1e   : > { %444 = vmatpush.bf16.msra.mxu1 %v752_v3  ;;  %v293_v23 = vld [vmem:[%s247_s12] sm:$0xff]  ;;  %s508_s9 = sshll.u32 %s504_s7, 4  ;;  %s509_s9 = int_to_ptr.hbm [resolvable:$true] %s508_s9 }
  0x1f   : > { %s824_s13 = sshra.s32 %s509_s9, 4  ;;  %s825_s13 = int_to_ptr.hbm [resolvable:$true] %s824_s13 }
  0x20   : > { %s826_s14 = scalar_lea.hbm %s825_s13, 8  ;;  %p831_p1 = scmp.lt.s32.totalorder %s825_s13, %s1064_s2 }
  0x21   : > { %432 = vmatpush.bf16.msra.mxu0 %v743_v4  ;;  %p827_p12 = scmp.ne.s32.totalorder %s825_s13, %s826_s14  ;;  %p832_p2 = scmp.lt.s32.totalorder %s830_s24, %s826_s14 }
  0x22   : > { %445 = vmatpush.bf16.msra.mxu1 %v751_v5 }
  0x23   : > { %p828_p13 = pnand %p827_p12, %p956_p4  ;;  %p833_p3 = por %p832_p2, %p831_p1 }
  0x25   : > { %433 = vmatpush.bf16.msra.mxu0 %v742_v6  ;;  %p829_p0 = pneg %p828_p13 }
  0x26   : > { %446 = vmatpush.bf16.msra.mxu1 %v750_v7 }
  0x27   : > { %p834_p5 = pnand %p833_p3, %p829_p0 }
  0x29   : > { %434 = vmatpush.bf16.msra.mxu0 %v741_v8 }
  0x2a   : > { %447 = vmatpush.bf16.msra.mxu1 %v749_v9 }
  0x2d   : > { %435 = vmatpush.bf16.msra.mxu0 %v740_v10 }
  0x2e   : > { %448 = vmatpush.bf16.msra.mxu1 %v748_v11 }
  0x31   : > { %436 = vmatpush.bf16.msra.mxu0 %v739_v12 }
  0x32   : > { %449 = vmatpush.bf16.msra.mxu1 %v747_v13 }
  0x35   : > { %437 = vmatpush.bf16.msra.mxu0 %v738_v17 }
  0x36   : > { %450 = vmatpush.bf16.msra.mxu1 %v746_v18 }
  0x38   : > { %438 = vmatmul.bf16.vlgmr.msra.gmra.mxu0 %v330_v19 }
  0x39   : > { %451 = vmatmul.bf16.vlgmr.msra.gmra.mxu1 %v331_v20 }
  0xb5   : > { %v439_v22 = vpop.f32.mrf.mxu0 }
  0xb6   : > { %v452_v24 = vpop.f32.mrf.mxu1 }
  0xb7   : > { %v453_v25 = vadd.f32 %v452_v24, %v439_v22 }
  0xb9   : > { %v456_v26 = vadd.f32 %v453_v25, %v293_v23 }
  0xbb   : > { %458 = vst.msk [vmem:[%s247_s12] sm:$0xff] %vm291_vm0, %v456_v26 }
  0xbd   : > { %v441_v27 = vpop.f32.mrf.mxu0 }
  0xbe   : > { %v454_v28 = vpop.f32.mrf.mxu1 }
  0xc2   : > { %v462_v29 = vld [vmem:[%s247_s12] sm:$0xff] }
  0xc3   : > { %v471_v30 = vsel %vm291_vm0, %v462_v29, 0.0 }
  0xc4   : > { %837 = shalt.err (!%p834_p5)
}
  0xc5   : > { %754 = dma.vmem_to_hbm [thread:$0]  (%p956_p4), %s507_s8, 128, %s509_s9, %s485_s11   ;;  %472 = vadd.xlane.f32.xlu0 %v471_v30  ;;  %v478_v31 = vmul.f32 %v462_v29, %v462_v29  ;;  %v470_v33 = vld [vmem:[%s1006_s22] sm:$0xff] }
  0xc6   : > { %v477_v36 = vld [vmem:[%s1013_s30] sm:$0xff] }
  0xc7   : > { %v479_v32 = vsel %vm291_vm0, %v478_v31, 0.0 }
  0xcd   : > { %480 = vadd.xlane.f32.xlu0 %v479_v32 }
 0x138   : > { %v473_v34 = vpop.xlane.xlu0 %472 }
 0x139   : > { %v474_v35 = vadd.f32 %v473_v34, %v470_v33 }
 0x13b   : > { %476 = vst.msk [vmem:[%s1006_s22] sm:$0xff] %vm467_vm1, %v474_v35 }
 0x140   : > { %v481_v37 = vpop.xlane.xlu0 %480 }
 0x141   : > { %v482_v38 = vadd.f32 %v481_v37, %v477_v36 }
 0x143   : > { %483 = vst.msk [vmem:[%s1013_s30] sm:$0xff] %vm467_vm1, %v482_v38 }
 0x144 PF: > { %p760_p4 = scmp.ge.s32.totalorder %s888_s20, 2  ;;  %s526_s25 = sand.u32 1, %s868_s15  }
 0x145   : > { %s527_s10 = scalar_lea.sflag [#allocation3], %s526_s25 }
 0x146   : > { %p757_p6 = pnand %p760_p4, %p963_p8 }
 0x148   : > { %p758_p7 = pneg %p757_p6 }
 0x14a   : > { %863 = dma.done.wait (%p758_p7), %s527_s10, 128  }
 0x14b   : > { %865 = vsyncadd (%p758_p7), %s527_s10, 4294967168  ;;  %s18_s20 = sadd.s32 1, %s888_s20   ;;  %s1069_s15 = smov %s872_s16 }
 0x14c   : > { %p15_p9 = scmp.ge.s32.totalorder %s18_s20, 4   ;;  %s1070_s16 = smov %s876_s17 }
 0x14d   : > { %s1071_s17 = smov %s969_s28  ;;  %s1072_s18 = smov %s884_s19 }
 0x14e   : > { %s1073_s19 = smov %s1075_s23  ;;  %17 = sbr.rel (!%p15_p9) target bundleno = 4 (0x4), region = 102 }
 0x153   :  { %547 = vsyncpa [#allocation3], 1 }
 0x154   :  { %549 = vsyncpa [#allocation3 + $0x1], 1 }

</bundles_post_ra>
